<compile_context>
chip_gen: v7x
topology: tpu7x:2x2x1
jax: 0.10.0
libtpu: 0.0.40
codegen_flags: <defaults>
</compile_context>

<pallas_src>
import functools
import numpy as np
import jax
import jax.numpy as jnp
from jax.experimental import pallas as pl
from jax.experimental.pallas import tpu as pltpu


# ------------------------------ in-kernel helpers ------------------------------

def _shift_flat(a, s):
    """b[:, l] = a[:, l + s] for l < L - s, zero past the end. `s` is static."""
    if s == 0:
        return a
    return jnp.concatenate(
        [a[:, s:], jnp.zeros((a.shape[0], s), jnp.float32)], axis=1)


def _im2col(a, k, pad, w):
    """Stack k*k flat-shifted copies of the (cin, H*W) slab.

    Row ((ky*k + kx)*cin + c) holds a[c] shifted by (pad-ky, pad-kx) in the
    (H, W) frame (flattened with row stride `w`), matching a weight matrix
    laid out as wt.transpose(1, 2, 3, 0).reshape(cout, k*k*cin).
    """
    taps = [_shift_flat(a, (pad - ky) * w + (pad - kx))
            for ky in range(k) for kx in range(k)]
    return jnp.concatenate(taps, axis=0) if len(taps) > 1 else taps[0]


def _model_kernel(x_ref, w1_ref, b1_ref, w2_ref, b2_ref, mask_ref,
                  w3_ref, b3_ref, o_ref, *, h, w):
    x2 = x_ref[0]                                                   # (3, h*w)

    # conv_1: ConvTranspose2d(3, 4, k=1, s=1, p=0)  == 1x1 conv -> one matmul.
    v1 = jnp.dot(w1_ref[...], x2,
                 preferred_element_type=jnp.float32) + b1_ref[...]  # (4, h*w)

    # avg_pool2d(kernel=2, stride=1): mean of 4 spatially shifted copies.
    v2 = 0.25 * (v1 + _shift_flat(v1, 1)
                 + _shift_flat(v1, w) + _shift_flat(v1, w + 1))     # (4, h*w)

    # conv_2: ConvTranspose2d(4, 16, k=2, s=1, p=3) as a single im2col matmul.
    v3 = jnp.dot(w2_ref[...], _im2col(v2, 2, 3, w),
                 preferred_element_type=jnp.float32) + b2_ref[...]  # (16, h*w)

    # Zero everything outside conv_2's valid (h-6, w-6) window so conv_3's
    # output_padding reads (and any stale frame positions) see exact zeros.
    v3 = v3 * mask_ref[...]

    # conv_3: ConvTranspose2d(16, 16, k=3, s=1, p=2, output_padding=1).
    # TODO(synk): the source module declares conv_3 with in_channels=32
    # (mismatch vs the 16-channel input) and output_padding=1 with stride=1
    # (PyTorch rejects both at runtime); we keep in_channels=16 and realize
    # output_padding as bottom/right zero extension, as in the prior kernel.
    v4 = jnp.dot(w3_ref[...], _im2col(v3, 3, 2, w),
                 preferred_element_type=jnp.float32) + b3_ref[...]  # (16, h*w)

    # relu + one lane-dense store of the whole (16, h*w) frame; the wrapper
    # slices out the valid (h-7, w-7) window.
    o_ref[0] = jnp.maximum(v4, 0.0)


# ----------------------------------- wrapper -----------------------------------

def model_forward(x, w1, b1, w2, b2, w3, b3):
    n, cin, h, w = x.shape
    assert cin == 3 and h >= 8 and w >= 8
    hw = h * w
    h4, w4 = h - 7, w - 7
    f32 = jnp.float32

    # ConvTranspose2d weights (cin, cout, kH, kW) -> (cout, kH*kW*cin) MXU tiles.
    w1m = jnp.asarray(w1, f32).transpose(1, 2, 3, 0).reshape(4, 1 * 1 * 3)
    w2m = jnp.asarray(w2, f32).transpose(1, 2, 3, 0).reshape(16, 2 * 2 * 4)
    w3m = jnp.asarray(w3, f32).transpose(1, 2, 3, 0).reshape(16, 3 * 3 * 16)
    b1m = jnp.asarray(b1, f32).reshape(4, 1)
    b2m = jnp.asarray(b2, f32).reshape(16, 1)
    b3m = jnp.asarray(b3, f32).reshape(16, 1)
    x2 = jnp.asarray(x, f32).reshape(n, 3, hw)

    # 0/1 mask of conv_2's valid (h-6, w-6) window inside the (h, w) frame.
    idx = jnp.arange(hw, dtype=jnp.int32)
    mask = (((idx // w) < (h - 6)) & ((idx % w) < (w - 6))).astype(f32).reshape(1, hw)

    kernel = functools.partial(_model_kernel, h=h, w=w)
    const = lambda i: (0, 0)

    flops = 2 * n * hw * (4 * 3 + 16 * 16 + 16 * 144)
    bytes_accessed = 4 * (n * 3 * hw + n * 16 * hw + hw
                          + 4 * 3 + 4 + 16 * 16 + 16 + 16 * 144 + 16)

    full = pl.pallas_call(
        kernel,
        out_shape=jax.ShapeDtypeStruct((n, 16, hw), f32),
        grid=(n,),
        in_specs=[
            pl.BlockSpec((1, 3, hw), lambda i: (i, 0, 0)),  # x, per-batch block
            pl.BlockSpec((4, 3), const),                    # conv_1 weight tile
            pl.BlockSpec((4, 1), const),                    # conv_1 bias
            pl.BlockSpec((16, 16), const),                  # conv_2 weight tile
            pl.BlockSpec((16, 1), const),                   # conv_2 bias
            pl.BlockSpec((1, hw), const),                   # valid-window mask
            pl.BlockSpec((16, 144), const),                 # conv_3 weight tile
            pl.BlockSpec((16, 1), const),                   # conv_3 bias
        ],
        out_specs=pl.BlockSpec((1, 16, hw), lambda i: (i, 0, 0)),
        compiler_params=pltpu.CompilerParams(
            dimension_semantics=("parallel",),
            vmem_limit_bytes=32 * 1024 * 1024),
        cost_estimate=pl.CostEstimate(
            flops=flops, transcendentals=0, bytes_accessed=bytes_accessed),
    )(x2, w1m, b1m, w2m, b2m, mask, w3m, b3m)

    # Back to NCHW and keep only the valid (h-7, w-7) output window.
    return full.reshape(n, 16, h, w)[:, :, :h4, :w4]


# ------------------------------- numpy reference -------------------------------

def _ref_forward(x, w1, b1, w2, b2, w3, b3):
    def conv_t(inp, wt, b, pad, out_pad):
        n, cin, h, w = inp.shape
        cout, k = wt.shape[1], wt.shape[2]
        hout = h - 2 * pad + (k - 1) + out_pad
        wout = w - 2 * pad + (k - 1) + out_pad
        inp = np.pad(inp, ((0, 0), (0, 0), (0, out_pad), (0, out_pad)))
        out = np.zeros((n, cout, hout, wout), np.float32)
        for ky in range(k):
            for kx in range(k):
                patch = inp[:, :, pad - ky:pad - ky + hout, pad - kx:pad - kx + wout]
                out += np.einsum('nchw,co->nohw', patch, wt[:, :, ky, kx])
        return out + b[None, :, None, None]

    v1 = conv_t(x, w1, b1, 0, 0)
    v2 = 0.25 * (v1[:, :, :-1, :-1] + v1[:, :, 1:, :-1]
                 + v1[:, :, :-1, 1:] + v1[:, :, 1:, 1:])
    v3 = conv_t(v2, w2, b2, 3, 0)
    v4 = conv_t(v3, w3, b3, 2, 1)
    return np.maximum(v4, 0.0)


if __name__ == "__main__":
    key = jax.random.PRNGKey(0)
    kx, k1, k2, k3, k4, k5, k6 = jax.random.split(key, 7)

    # Small shapes consistent with the module's (N, 3, H, W) input.
    x = jax.random.normal(kx, (2, 3, 16, 16), jnp.float32)

    # PyTorch ConvTranspose2d weight layout: (in_channels, out_channels, kH, kW).
    w1 = jax.random.uniform(k1, (3, 4, 1, 1), jnp.float32, -0.5, 0.5)
    b1 = jax.random.uniform(k2, (4,), jnp.float32, -0.5, 0.5)
    w2 = jax.random.uniform(k3, (4, 16, 2, 2), jnp.float32, -0.25, 0.25)
    b2 = jax.random.uniform(k4, (16,), jnp.float32, -0.25, 0.25)
    # TODO(synk): conv_3 declared with in_channels=32 in the source module; using 16
    # so the forward chain is well-formed.
    w3 = jax.random.uniform(k5, (16, 16, 3, 3), jnp.float32, -0.1, 0.1)
    b3 = jax.random.uniform(k6, (16,), jnp.float32, -0.1, 0.1)

    out = jax.block_until_ready(model_forward(x, w1, b1, w2, b2, w3, b3))

    ref = _ref_forward(np.asarray(x), np.asarray(w1), np.asarray(b1),
                       np.asarray(w2), np.asarray(b2),
                       np.asarray(w3), np.asarray(b3))
    assert out.shape == ref.shape, (out.shape, ref.shape)
    np.testing.assert_allclose(np.asarray(out), ref, rtol=2e-3, atol=2e-3)
    print("KERNEL_OK")
</pallas_src>

<mosaic_0001>
module attributes {stable_mosaic.version = 11 : i64} {
  func.func @_model_kernel(%arg0: i32, %arg1: memref<1x3x256xf32, #tpu.memory_space<vmem>>, %arg2: memref<4x3xf32, #tpu.memory_space<vmem>>, %arg3: memref<4x1xf32, #tpu.memory_space<vmem>>, %arg4: memref<16x16xf32, #tpu.memory_space<vmem>>, %arg5: memref<16x1xf32, #tpu.memory_space<vmem>>, %arg6: memref<1x256xf32, #tpu.memory_space<vmem>>, %arg7: memref<16x144xf32, #tpu.memory_space<vmem>>, %arg8: memref<16x1xf32, #tpu.memory_space<vmem>>, %arg9: memref<1x16x256xf32, #tpu.memory_space<vmem>>) attributes {dimension_semantics = [#tpu.dimension_semantics<parallel>], iteration_bounds = array<i64: 2>, scalar_prefetch = 0 : i64, scratch_operands = 0 : i64, tpu.core_type = #tpu.core_type<tc>, window_params = [{transform_indices = @transform_0, window_bounds = array<i64: 1, 3, 256>}, {pipeline_mode = #tpu.pipeline_mode<synchronous>, transform_indices = @transform_1, window_bounds = array<i64: 4, 3>}, {pipeline_mode = #tpu.pipeline_mode<synchronous>, transform_indices = @transform_2, window_bounds = array<i64: 4, 1>}, {pipeline_mode = #tpu.pipeline_mode<synchronous>, transform_indices = @transform_3, window_bounds = array<i64: 16, 16>}, {pipeline_mode = #tpu.pipeline_mode<synchronous>, transform_indices = @transform_4, window_bounds = array<i64: 16, 1>}, {pipeline_mode = #tpu.pipeline_mode<synchronous>, transform_indices = @transform_5, window_bounds = array<i64: 1, 256>}, {pipeline_mode = #tpu.pipeline_mode<synchronous>, transform_indices = @transform_6, window_bounds = array<i64: 16, 144>}, {pipeline_mode = #tpu.pipeline_mode<synchronous>, transform_indices = @transform_7, window_bounds = array<i64: 16, 1>}, {transform_indices = @transform_8, window_bounds = array<i64: 1, 16, 256>}]} {
    %c0 = arith.constant 0 : index
    %c0_0 = arith.constant 0 : index
    %c0_1 = arith.constant 0 : index
    %0 = vector.load %arg1[%c0, %c0_0, %c0_1] : memref<1x3x256xf32, #tpu.memory_space<vmem>>, vector<1x3x256xf32>
    %1 = vector.shape_cast %0 : vector<1x3x256xf32> to vector<3x256xf32>
    %c0_2 = arith.constant 0 : index
    %c0_3 = arith.constant 0 : index
    %2 = vector.load %arg2[%c0_2, %c0_3] : memref<4x3xf32, #tpu.memory_space<vmem>>, vector<4x3xf32>
    %cst = arith.constant dense<0.000000e+00> : vector<4x256xf32>
    %3 = tpu.matmul %2, %1, %cst {dimension_numbers = #tpu.dot_dimension_numbers<[1], [0], [0], [1], [0, 0, 1, 1], [], []>} : vector<4x3xf32>, vector<3x256xf32>, vector<4x256xf32> -> vector<4x256xf32>
    %c0_4 = arith.constant 0 : index
    %c0_5 = arith.constant 0 : index
    %4 = vector.load %arg3[%c0_4, %c0_5] : memref<4x1xf32, #tpu.memory_space<vmem>>, vector<4x1xf32>
    %5 = vector.broadcast %4 : vector<4x1xf32> to vector<4x256xf32>
    %6 = arith.addf %3, %5 : vector<4x256xf32>
    %7 = vector.extract_strided_slice %6 {offsets = [0, 1], sizes = [4, 255], strides = [1, 1]} : vector<4x256xf32> to vector<4x255xf32>
    %cst_6 = arith.constant 0.000000e+00 : f32
    %8 = vector.broadcast %cst_6 : f32 to vector<4x1xf32>
    %9 = tpu.concatenate %7, %8 in 1 : vector<4x255xf32>, vector<4x1xf32> -> vector<4x256xf32>
    %10 = arith.addf %6, %9 : vector<4x256xf32>
    %11 = vector.extract_strided_slice %6 {offsets = [0, 16], sizes = [4, 240], strides = [1, 1]} : vector<4x256xf32> to vector<4x240xf32>
    %cst_7 = arith.constant 0.000000e+00 : f32
    %12 = vector.broadcast %cst_7 : f32 to vector<4x16xf32>
    %13 = tpu.concatenate %11, %12 in 1 : vector<4x240xf32>, vector<4x16xf32> -> vector<4x256xf32>
    %14 = arith.addf %10, %13 : vector<4x256xf32>
    %15 = vector.extract_strided_slice %6 {offsets = [0, 17], sizes = [4, 239], strides = [1, 1]} : vector<4x256xf32> to vector<4x239xf32>
    %cst_8 = arith.constant 0.000000e+00 : f32
    %16 = vector.broadcast %cst_8 : f32 to vector<4x17xf32>
    %17 = tpu.concatenate %15, %16 in 1 : vector<4x239xf32>, vector<4x17xf32> -> vector<4x256xf32>
    %18 = arith.addf %14, %17 : vector<4x256xf32>
    %cst_9 = arith.constant 2.500000e-01 : f32
    %19 = vector.broadcast %cst_9 : f32 to vector<4x256xf32>
    %20 = arith.mulf %19, %18 : vector<4x256xf32>
    %c0_10 = arith.constant 0 : index
    %c0_11 = arith.constant 0 : index
    %21 = vector.load %arg4[%c0_10, %c0_11] : memref<16x16xf32, #tpu.memory_space<vmem>>, vector<16x16xf32>
    %22 = vector.extract_strided_slice %20 {offsets = [0, 51], sizes = [4, 205], strides = [1, 1]} : vector<4x256xf32> to vector<4x205xf32>
    %cst_12 = arith.constant 0.000000e+00 : f32
    %23 = vector.broadcast %cst_12 : f32 to vector<4x51xf32>
    %24 = tpu.concatenate %22, %23 in 1 : vector<4x205xf32>, vector<4x51xf32> -> vector<4x256xf32>
    %25 = vector.extract_strided_slice %20 {offsets = [0, 50], sizes = [4, 206], strides = [1, 1]} : vector<4x256xf32> to vector<4x206xf32>
    %cst_13 = arith.constant 0.000000e+00 : f32
    %26 = vector.broadcast %cst_13 : f32 to vector<4x50xf32>
    %27 = tpu.concatenate %25, %26 in 1 : vector<4x206xf32>, vector<4x50xf32> -> vector<4x256xf32>
    %28 = vector.extract_strided_slice %20 {offsets = [0, 35], sizes = [4, 221], strides = [1, 1]} : vector<4x256xf32> to vector<4x221xf32>
    %cst_14 = arith.constant 0.000000e+00 : f32
    %29 = vector.broadcast %cst_14 : f32 to vector<4x35xf32>
    %30 = tpu.concatenate %28, %29 in 1 : vector<4x221xf32>, vector<4x35xf32> -> vector<4x256xf32>
    %31 = vector.extract_strided_slice %20 {offsets = [0, 34], sizes = [4, 222], strides = [1, 1]} : vector<4x256xf32> to vector<4x222xf32>
    %cst_15 = arith.constant 0.000000e+00 : f32
    %32 = vector.broadcast %cst_15 : f32 to vector<4x34xf32>
    %33 = tpu.concatenate %31, %32 in 1 : vector<4x222xf32>, vector<4x34xf32> -> vector<4x256xf32>
    %34 = tpu.concatenate %24, %27, %30, %33 in 0 : vector<4x256xf32>, vector<4x256xf32>, vector<4x256xf32>, vector<4x256xf32> -> vector<16x256xf32>
    %cst_16 = arith.constant dense<0.000000e+00> : vector<16x256xf32>
    %35 = tpu.matmul %21, %34, %cst_16 {dimension_numbers = #tpu.dot_dimension_numbers<[1], [0], [0], [1], [0, 0, 1, 1], [], []>} : vector<16x16xf32>, vector<16x256xf32>, vector<16x256xf32> -> vector<16x256xf32>
    %c0_17 = arith.constant 0 : index
    %c0_18 = arith.constant 0 : index
    %36 = vector.load %arg5[%c0_17, %c0_18] : memref<16x1xf32, #tpu.memory_space<vmem>>, vector<16x1xf32>
    %37 = vector.broadcast %36 : vector<16x1xf32> to vector<16x256xf32>
    %38 = arith.addf %35, %37 : vector<16x256xf32>
    %c0_19 = arith.constant 0 : index
    %c0_20 = arith.constant 0 : index
    %39 = vector.load %arg6[%c0_19, %c0_20] : memref<1x256xf32, #tpu.memory_space<vmem>>, vector<1x256xf32>
    %40 = vector.broadcast %39 : vector<1x256xf32> to vector<16x256xf32>
    %41 = arith.mulf %38, %40 : vector<16x256xf32>
    %c0_21 = arith.constant 0 : index
    %c0_22 = arith.constant 0 : index
    %42 = vector.load %arg7[%c0_21, %c0_22] : memref<16x144xf32, #tpu.memory_space<vmem>>, vector<16x144xf32>
    %43 = vector.extract_strided_slice %41 {offsets = [0, 34], sizes = [16, 222], strides = [1, 1]} : vector<16x256xf32> to vector<16x222xf32>
    %cst_23 = arith.constant 0.000000e+00 : f32
    %44 = vector.broadcast %cst_23 : f32 to vector<16x34xf32>
    %45 = tpu.concatenate %43, %44 in 1 : vector<16x222xf32>, vector<16x34xf32> -> vector<16x256xf32>
    %46 = vector.extract_strided_slice %41 {offsets = [0, 33], sizes = [16, 223], strides = [1, 1]} : vector<16x256xf32> to vector<16x223xf32>
    %cst_24 = arith.constant 0.000000e+00 : f32
    %47 = vector.broadcast %cst_24 : f32 to vector<16x33xf32>
    %48 = tpu.concatenate %46, %47 in 1 : vector<16x223xf32>, vector<16x33xf32> -> vector<16x256xf32>
    %49 = vector.extract_strided_slice %41 {offsets = [0, 32], sizes = [16, 224], strides = [1, 1]} : vector<16x256xf32> to vector<16x224xf32>
    %cst_25 = arith.constant 0.000000e+00 : f32
    %50 = vector.broadcast %cst_25 : f32 to vector<16x32xf32>
    %51 = tpu.concatenate %49, %50 in 1 : vector<16x224xf32>, vector<16x32xf32> -> vector<16x256xf32>
    %52 = vector.extract_strided_slice %41 {offsets = [0, 18], sizes = [16, 238], strides = [1, 1]} : vector<16x256xf32> to vector<16x238xf32>
    %cst_26 = arith.constant 0.000000e+00 : f32
    %53 = vector.broadcast %cst_26 : f32 to vector<16x18xf32>
    %54 = tpu.concatenate %52, %53 in 1 : vector<16x238xf32>, vector<16x18xf32> -> vector<16x256xf32>
    %55 = vector.extract_strided_slice %41 {offsets = [0, 17], sizes = [16, 239], strides = [1, 1]} : vector<16x256xf32> to vector<16x239xf32>
    %cst_27 = arith.constant 0.000000e+00 : f32
    %56 = vector.broadcast %cst_27 : f32 to vector<16x17xf32>
    %57 = tpu.concatenate %55, %56 in 1 : vector<16x239xf32>, vector<16x17xf32> -> vector<16x256xf32>
    %58 = vector.extract_strided_slice %41 {offsets = [0, 16], sizes = [16, 240], strides = [1, 1]} : vector<16x256xf32> to vector<16x240xf32>
    %cst_28 = arith.constant 0.000000e+00 : f32
    %59 = vector.broadcast %cst_28 : f32 to vector<16x16xf32>
    %60 = tpu.concatenate %58, %59 in 1 : vector<16x240xf32>, vector<16x16xf32> -> vector<16x256xf32>
    %61 = vector.extract_strided_slice %41 {offsets = [0, 2], sizes = [16, 254], strides = [1, 1]} : vector<16x256xf32> to vector<16x254xf32>
    %cst_29 = arith.constant 0.000000e+00 : f32
    %62 = vector.broadcast %cst_29 : f32 to vector<16x2xf32>
    %63 = tpu.concatenate %61, %62 in 1 : vector<16x254xf32>, vector<16x2xf32> -> vector<16x256xf32>
    %64 = vector.extract_strided_slice %41 {offsets = [0, 1], sizes = [16, 255], strides = [1, 1]} : vector<16x256xf32> to vector<16x255xf32>
    %cst_30 = arith.constant 0.000000e+00 : f32
    %65 = vector.broadcast %cst_30 : f32 to vector<16x1xf32>
    %66 = tpu.concatenate %64, %65 in 1 : vector<16x255xf32>, vector<16x1xf32> -> vector<16x256xf32>
    %67 = tpu.concatenate %45, %48, %51, %54, %57, %60, %63, %66, %41 in 0 : vector<16x256xf32>, vector<16x256xf32>, vector<16x256xf32>, vector<16x256xf32>, vector<16x256xf32>, vector<16x256xf32>, vector<16x256xf32>, vector<16x256xf32>, vector<16x256xf32> -> vector<144x256xf32>
    %cst_31 = arith.constant dense<0.000000e+00> : vector<16x256xf32>
    %68 = tpu.matmul %42, %67, %cst_31 {dimension_numbers = #tpu.dot_dimension_numbers<[1], [0], [0], [1], [0, 0, 1, 1], [], []>} : vector<16x144xf32>, vector<144x256xf32>, vector<16x256xf32> -> vector<16x256xf32>
    %c0_32 = arith.constant 0 : index
    %c0_33 = arith.constant 0 : index
    %69 = vector.load %arg8[%c0_32, %c0_33] : memref<16x1xf32, #tpu.memory_space<vmem>>, vector<16x1xf32>
    %70 = vector.broadcast %69 : vector<16x1xf32> to vector<16x256xf32>
    %71 = arith.addf %68, %70 : vector<16x256xf32>
    %cst_34 = arith.constant 0.000000e+00 : f32
    %72 = vector.broadcast %cst_34 : f32 to vector<16x256xf32>
    %73 = arith.maximumf %71, %72 : vector<16x256xf32>
    %c0_35 = arith.constant 0 : index
    %c0_36 = arith.constant 0 : index
    %c0_37 = arith.constant 0 : index
    %74 = vector.load %arg9[%c0_35, %c0_36, %c0_37] : memref<1x16x256xf32, #tpu.memory_space<vmem>>, vector<1x16x256xf32>
    %75 = vector.shape_cast %74 : vector<1x16x256xf32> to vector<16x256xf32>
    %76 = vector.shape_cast %73 : vector<16x256xf32> to vector<1x16x256xf32>
    tpu.vector_store %arg9[%c0_35, %c0_36, %c0_37], %76 {strides = array<i32>} : memref<1x16x256xf32, #tpu.memory_space<vmem>>, vector<1x16x256xf32>,
    return
  }
  func.func @transform_0(%arg0: i32) -> (i32, i32, i32) {
    %c0_i32 = arith.constant 0 : i32
    %c0_i32_0 = arith.constant 0 : i32
    %c0_i32_1 = arith.constant 0 : i32
    return %arg0, %c0_i32, %c0_i32_0 : i32, i32, i32
  }
  func.func @transform_1(%arg0: i32) -> (i32, i32) {
    %c0_i32 = arith.constant 0 : i32
    %c0_i32_0 = arith.constant 0 : i32
    %c0_i32_1 = arith.constant 0 : i32
    return %c0_i32, %c0_i32_0 : i32, i32
  }
  func.func @transform_2(%arg0: i32) -> (i32, i32) {
    %c0_i32 = arith.constant 0 : i32
    %c0_i32_0 = arith.constant 0 : i32
    %c0_i32_1 = arith.constant 0 : i32
    return %c0_i32, %c0_i32_0 : i32, i32
  }
  func.func @transform_3(%arg0: i32) -> (i32, i32) {
    %c0_i32 = arith.constant 0 : i32
    %c0_i32_0 = arith.constant 0 : i32
    %c0_i32_1 = arith.constant 0 : i32
    return %c0_i32, %c0_i32_0 : i32, i32
  }
  func.func @transform_4(%arg0: i32) -> (i32, i32) {
    %c0_i32 = arith.constant 0 : i32
    %c0_i32_0 = arith.constant 0 : i32
    %c0_i32_1 = arith.constant 0 : i32
    return %c0_i32, %c0_i32_0 : i32, i32
  }
  func.func @transform_5(%arg0: i32) -> (i32, i32) {
    %c0_i32 = arith.constant 0 : i32
    %c0_i32_0 = arith.constant 0 : i32
    %c0_i32_1 = arith.constant 0 : i32
    return %c0_i32, %c0_i32_0 : i32, i32
  }
  func.func @transform_6(%arg0: i32) -> (i32, i32) {
    %c0_i32 = arith.constant 0 : i32
    %c0_i32_0 = arith.constant 0 : i32
    %c0_i32_1 = arith.constant 0 : i32
    return %c0_i32, %c0_i32_0 : i32, i32
  }
  func.func @transform_7(%arg0: i32) -> (i32, i32) {
    %c0_i32 = arith.constant 0 : i32
    %c0_i32_0 = arith.constant 0 : i32
    %c0_i32_1 = arith.constant 0 : i32
    return %c0_i32, %c0_i32_0 : i32, i32
  }
  func.func @transform_8(%arg0: i32) -> (i32, i32, i32) {
    %c0_i32 = arith.constant 0 : i32
    %c0_i32_0 = arith.constant 0 : i32
    %c0_i32_1 = arith.constant 0 : i32
    return %arg0, %c0_i32, %c0_i32_0 : i32, i32, i32
  }
}

</mosaic_0001>

<bundles_post_ra>
// kernel: tpu_custom_call.1
= control target key start
LH: loop header
LB: loop body
LE: loop exit
PB: predicated region body
PF: predicated region fallthrough
CT: control target
= control target key end

     0   :  { %13 = vsyncpa [#allocation3], 0  ;;  %s1496_s0 = inlined_call_operand.vmem [shape: f32[2,3,256], index: 0, kind: input, shape index: {}]   ;;  %s1497_s1 = inlined_call_operand.vmem [shape: f32[4,3], index: 1, kind: input, shape index: {}]   ;;  %s1498_s2 = inlined_call_operand.vmem [shape: f32[4,1], index: 2, kind: input, shape index: {}]   ;;  %s1499_s3 = inlined_call_operand.vmem [shape: f32[16,16], index: 3, kind: input, shape index: {}]   ;;  %s1500_s4 = inlined_call_operand.vmem [shape: f32[16,1], index: 4, kind: input, shape index: {}]   ;;  %s1501_s5 = inlined_call_operand.vmem [shape: f32[1,256], index: 5, kind: input, shape index: {}]   ;;  %s1502_s6 = inlined_call_operand.vmem [shape: f32[16,144], index: 6, kind: input, shape index: {}]   ;;  %s1503_s7 = inlined_call_operand.vmem [shape: f32[16,1], index: 7, kind: input, shape index: {}]   ;;  %s1504_s8 = inlined_call_operand.hbm [shape: f32[2,16,256], index: 8, kind: output, shape index: {}]  }
   0x1   :  { %15 = vsyncpa [#allocation3 + $0x1], 0  ;;  %s1282_s27 = smov 0   ;;  %s1284_s28 = smov 0  }
   0x2   :  { %s1286_s29 = smov 0   ;;  %s1288_s30 = smov 0  }
   0x3 LB: > { %s1303_s9 = sadd.s32 4294967295, %s1219_s30   ;;  %s915_s10 = sadd.s32 4294967294, %s1219_s30   ;;  %s1219_s30 = sphi %s1288_s30, %s1510_s30   ;;  %s1215_s29 = sphi %s1286_s29, %s1509_s29   ;;  %s1211_s28 = sphi %s1284_s28, %s1508_s28   ;;  %s1207_s27 = sphi %s1282_s27, %s1507_s27  }
   0x4   : > { %s1307_s11 = sadd.s32 1, %s1219_s30   ;;  %s201_s12 = sadd.s32 1, %s1215_s29 }
   0x5   : > { %s198_s13 = ssub.s32 %s1219_s30, %s1307_s11  ;;  %p211_p0 = scmp.ne.s32.totalorder %s1215_s29, %s1211_s28 }
   0x6   : > { %p199_p1 = scmp.eq.s32.totalorder %s198_s13, 0  ;;  %p212_p2 = scmp.eq.s32.totalorder %s1303_s9, 1 }
   0x7   : > { %p217_p3 = scmp.ne.s32.totalorder %s1211_s28, %s1207_s27  ;;  %p218_p4 = scmp.eq.s32.totalorder %s915_s10, 1 }
   0x8   : > { %s1318_s14 = scalar_select %p199_p1, %s1215_s29, %s201_s12  }
   0x9   : > { %p1320_p5 = por %p212_p2, %p211_p0  ;;  %p1324_p6 = por %p218_p4, %p217_p3 }
   0xa   : > { %p918_p7 = scmp.ge.s32.totalorder %s1219_s30, 1  ;;  %p265_p8 = scmp.lt.s32.totalorder %s1219_s30, 3 }
   0xc   : > { %p266_p9 = pnand %p918_p7, %p265_p8 }
   0xd   : > { %p299_p10 = scmp.lt.s32.totalorder (!%p266_p9), %s1303_s9, 1  ;;  %v1221_v0 = vmov (!%p266_p9), 0.0   ;;  %v306_v1 = vld [vmem:[%s1498_s2] sm:$0xf] (!%p266_p9)  ;;  %v1222_v2 = vmov (!%p266_p9), 0   ;;  %vm318_vm0 = vcmask (!%p266_p9), 1042432  }
   0xe   : > { %269 = sbr.rel (%p266_p9) target bundleno = 1118 (0x45e), region = 52  ;;  %387 = vmatprep.mubr.f32.mxu1 (!%p266_p9), %v1221_v0  ;;  %1054 = vset.pattern.permute.xlu0 (!%p266_p9), %v1222_v2  ;;  %v305_v5 = vld [vmem:[%s1497_s1] sm:$0xf] (!%p266_p9)  ;;  %vm314_vm1 = vcmask (!%p266_p9), 23552   ;;  %s1223_s26 = smov (!%p266_p9), 127   ;;  %vm400_vm2 = vcmask (!%p266_p9), 1039360  }
   0xf   : > { %1075 = vset.pattern.permute.xlu1 (!%p266_p9), %v1222_v2  ;;  %309 = vperm.xlu0 (!%p266_p9), %1054, %v306_v1   ;;  %s1224_s10 = smov (!%p266_p9), 112   ;;  %s1225_s12 = smov (!%p266_p9), 111   ;;  %vm411_vm3 = vcmask (!%p266_p9), 916480   ;;  %vm422_vm4 = vcmask (!%p266_p9), 908288   ;;  %v485_v32 = vld [vmem:[%s1500_s4 + $0x8] sm:$0xff] (!%p266_p9)  ;;  %v484_v33 = vld [vmem:[%s1500_s4] sm:$0xff] (!%p266_p9) }
  0x10   : > { %s1226_s13 = smov (!%p266_p9), 94   ;;  %s1227_s17 = smov (!%p266_p9), 78   ;;  %vm465_vm5 = vcmask (!%p266_p9), 769024   ;;  %vm448_vm6 = vcmask (!%p266_p9), 637952   ;;  %vm456_vm7 = vcmask (!%p266_p9), 760832   ;;  %vm439_vm8 = vcmask (!%p266_p9), 629760  }
  0x11   : > { %s1228_s18 = smov (!%p266_p9), 93   ;;  %vm479_vm9 = vcmask (!%p266_p9), 1043456   ;;  %v431_v1 = vld [vmem:[%s1499_s3] sm:$0xff] (!%p266_p9)  ;;  %vm496_vm10 = vcmask (!%p266_p9), 130048   ;;  %v432_v2 = vld [vmem:[%s1499_s3 + $0x8] sm:$0xff] (!%p266_p9)  ;;  %s1230_s21 = smov (!%p266_p9), 95   ;;  %vm957_vm11 = vmpackc.low (!%p266_p9), %vm465_vm5, %vm465_vm5 }
  0x12   : > { %s1231_s22 = smov (!%p266_p9), 96   ;;  %vm628_vm12 = vcmask (!%p266_p9), 777216   ;;  %vm645_vm14 = vcmask (!%p266_p9), 785408  }
  0x13   : > { %vm962_vm13 = vmpackc.low (!%p266_p9), %vm628_vm12, %vm628_vm12 }
  0x14   : > { %vm967_vm15 = vmpackc.low (!%p266_p9), %vm645_vm14, %vm645_vm14 }
  0x15   : > { %s300_s19 = scalar_select %p299_p10, %s1303_s9, 1 }
  0x17   : > { %s950_s20 = sshll.u32 %s300_s19, 3  ;;  %s1229_s19 = smov 77  }
  0x18   : > { %s303_s23 = scalar_lea.vmem %s1496_s0, %s950_s20 }
  0x19   : > { %v304_v3 = vld [vmem:[%s303_s23] sm:$0x77]  ;;  %s1232_s23 = smov 110  }
  0x1a   : > { %v313_v4 = vcombine.high %v304_v3, %v304_v3 }
  0x1c   : > { %922 = vmatprep.subr.msk.mxu1 %vm318_vm0, %v313_v4 }
  0x1d   : > { %923 = vmatpush1.msk.msra.mxu1 %vm318_vm0, %v304_v3  ;;  %v582_v3 = vlaneseq  ;;  %vm662_vm0 = vcmask 900096  }
  0x1e   : > { %924 = vmatmul.mubr.msk.f32.vlgmr.msra.gmra.mrb[0].mxu1 %vm314_vm1, %v305_v5  ;;  %vm972_vm1 = vmpackc.low %vm662_vm0, %vm662_vm0 }
  0x1f   : > { %567 = vmatprep.mubr.f32.mxu1 %v1221_v0  ;;  %v583_v4 = vshrl.u32 %v582_v3, 7 }
  0x21   : > { %v584_v5 = vsub.s32 0, %v583_v4 }
  0x8e   : > { %v310_v6 = vpop.permute.xlu0 %309 }
  0xf1   : > { %v389_v7 = vpop.f32.mrb[0].mxu1 }
  0xf2   : > { %v390_v8 = vadd.f32 %v389_v7, %v310_v6  ;;  %v391_v9 = vpop.f32.mrb[1].mxu1  ;;  %v588_v7 = vsub.s32 1, %v583_v4 }
  0xf3   : > { %v392_v10 = vadd.f32 %v391_v9, %v310_v6  ;;  %v580_v6 = vld [vmem:[%s1501_s5] sm:$0x3] }
  0xf4   : > { %396 = vrot.lane.b32.xlu1 %v390_v8, %s1223_s26  ;;  %v585_v9 = vrot.slane %v580_v6, %v584_v5 }
  0xf5   : > { %398 = vrot.lane.b32.xlu0 %v392_v10, %s1223_s26 }
  0xf8   : > { %409 = vrot.lane.b32.xlu1 %v392_v10, %s1224_s10 }
  0xf9   : > { %407 = vrot.lane.b32.xlu0 %v390_v8, %s1224_s10 }
  0xfc   : > { %420 = vrot.lane.b32.xlu1 %v392_v10, %s1225_s12 }
  0xfd   : > { %418 = vrot.lane.b32.xlu0 %v390_v8, %s1225_s12 }
 0x166   : > { %v397_v11 = vpop.permute.xlu1 %396 }
 0x167   : > { %v399_v12 = vpop.permute.xlu0 %398 }
 0x168   : > { %v404_v13 = vsel %vm400_vm2, %v399_v12, 0.0  ;;  %v401_v14 = vsel %vm400_vm2, %v397_v11, %v399_v12  ;;  %v589_v11 = vrot.slane %v580_v6, %v588_v7 }
 0x169   : > { %v406_v15 = vadd.f32 %v404_v13, %v392_v10  ;;  %v405_v20 = vadd.f32 %v401_v14, %v390_v8 }
 0x16a   : > { %v410_v16 = vpop.permute.xlu1 %409 }
 0x16b   : > { %v415_v17 = vsel %vm411_vm3, %v410_v16, 0.0  ;;  %v408_v18 = vpop.permute.xlu0 %407 }
 0x16c   : > { %v412_v19 = vsel %vm411_vm3, %v408_v18, %v410_v16  ;;  %v417_v21 = vadd.f32 %v415_v17, %v406_v15 }
 0x16d   : > { %v416_v23 = vadd.f32 %v412_v19, %v405_v20 }
 0x16e   : > { %v421_v22 = vpop.permute.xlu1 %420 }
 0x16f   : > { %v426_v24 = vsel %vm422_vm4, %v421_v22, 0.0  ;;  %v419_v25 = vpop.permute.xlu0 %418 }
 0x170   : > { %v428_v26 = vadd.f32 %v426_v24, %v417_v21  ;;  %v423_v27 = vsel %vm422_vm4, %v419_v25, %v421_v22 }
 0x171   : > { %v427_v28 = vadd.f32 %v423_v27, %v416_v23  ;;  %v597_v27 = vld [vmem:[%s1502_s6 + $0x8] sm:$0xff] }
 0x172   : > { %v430_v29 = vmul.f32 0.25, %v428_v26  ;;  %943 = vmatprep.mubr.msk.f32.mxu0 %vm496_vm10, %v597_v27 }
 0x173   : > { %v429_v30 = vmul.f32 0.25, %v427_v28  ;;  %v736_v28 = vld [vmem:[%s1503_s7] sm:$0xff] }
 0x175   : > { %v1060_v31 = vpack.i.bf16 %v429_v30, %v430_v29  ;;  %v737_v29 = vld [vmem:[%s1503_s7 + $0x8] sm:$0xff] }
 0x177   : > { %1061 = vrot.lane.b32.xlu0 %v1060_v31, %s1226_s13  ;;  %1056 = vrot.lane.b32.xlu1 %v1060_v31, %s1227_s17 }
 0x17b   : > { %1071 = vrot.lane.b32.xlu0 %v1060_v31, %s1228_s18  ;;  %1066 = vrot.lane.b32.xlu1 %v1060_v31, %s1229_s19  ;;  %s951_s18 = sshll.u32 %s1303_s9, 9  ;;  %s1234_s9 = smov [#allocation2]  }
 0x17f   : > { %493 = vperm.xlu0 %1054, %v485_v32   ;;  %488 = vperm.xlu1 %1075, %v484_v33  }
 0x1e9   : > { %v1062_v34 = vpop.permute.xlu0 %1061  ;;  %v1057_v35 = vpop.permute.xlu1 %1056 }
 0x1ea   : > { %v1064_v36 = vunpack.i.h.bf16 %v1062_v34  ;;  %v1063_v37 = vunpack.i.l.bf16 %v1062_v34  ;;  %v1059_v38 = vunpack.i.h.bf16 %v1057_v35  ;;  %v1058_v39 = vunpack.i.l.bf16 %v1057_v35 }
 0x1ec   : > { %v466_v40 = vsel %vm465_vm5, %v1064_v36, %v1063_v37  ;;  %v468_v41 = vsel %vm465_vm5, %v1063_v37, 0.0  ;;  %v449_v42 = vsel %vm448_vm6, %v1059_v38, %v1058_v39  ;;  %v451_v43 = vsel %vm448_vm6, %v1058_v39, 0.0  ;;  %vm982_vm6 = vmpackc.low %vm411_vm3, %vm411_vm3 }
 0x1ed   : > { %v1072_v44 = vpop.permute.xlu0 %1071  ;;  %v1067_v45 = vpop.permute.xlu1 %1066  ;;  %v475_v50 = vrot.slane %v466_v40, 4  ;;  %v476_v51 = vrot.slane %v468_v41, 4  ;;  %v470_v52 = vrot.slane %v449_v42, 4  ;;  %v471_v53 = vrot.slane %v451_v43, 4 }
 0x1ee   : > { %v1074_v46 = vunpack.i.h.bf16 %v1072_v44  ;;  %v1073_v47 = vunpack.i.l.bf16 %v1072_v44  ;;  %v1069_v48 = vunpack.i.h.bf16 %v1067_v45  ;;  %v1068_v49 = vunpack.i.l.bf16 %v1067_v45 }
 0x1f0   : > { %v457_v54 = vsel %vm456_vm7, %v1074_v46, %v1073_v47  ;;  %v460_v55 = vsel %vm456_vm7, %v1073_v47, 0.0  ;;  %v440_v56 = vsel %vm439_vm8, %v1069_v48, %v1068_v49  ;;  %v443_v57 = vsel %vm439_vm8, %v1068_v49, 0.0 }
 0x1f1   : > { %v481_v58 = vsel %vm479_vm9, %v443_v57, %v471_v53  ;;  %v483_v59 = vsel %vm479_vm9, %v460_v55, %v476_v51  ;;  %v480_v60 = vsel %vm479_vm9, %v440_v56, %v470_v52  ;;  %v482_v61 = vsel %vm479_vm9, %v457_v54, %v475_v50 }
 0x1f2   : > { %v952_v62 = vpack.c.bf16 %v483_v59, %v481_v58  ;;  %v954_v63 = vpack.c.bf16 %v482_v61, %v480_v60  ;;  %vm711_vm7 = vcmask 1031168  }
 0x1f4   : > { %953 = vmatprep.subr.bf16.mxu1 %v952_v62 }
 0x1f5   : > { %955 = vmatpush1.bf16.msra.mxu1 %v954_v63 }
 0x1f8   : > { %925 = vmatmul.mubr.msk.f32.vlgmr.msra.gmra.mrb[2].mxu1 %vm496_vm10, %v431_v1 }
 0x1f9   : > { %573 = vmatprep.mubr.f32.mxu1 %v1221_v0 }
 0x1fc   : > { %926 = vmatmul.mubr.msk.f32.gmra.mrb[4].mxu1 %vm496_vm10, %v432_v2 }
 0x1fe   : > { %v489_v8 = vpop.permute.xlu1 %488  ;;  %v494_v15 = vpop.permute.xlu0 %493 }
 0x2cb   : > { %v569_v10 = vpop.f32.mrb[2].mxu1 }
 0x2cc   : > { %v570_v12 = vadd.f32 %v569_v10, %v489_v8  ;;  %v571_v0 = vpop.f32.mrb[3].mxu1 }
 0x2cd   : > { %v572_v13 = vadd.f32 %v571_v0, %v489_v8 }
 0x2ce   : > { %v1380_v14 = vmul.f32 %v585_v9, %v570_v12 }
 0x2cf   : > { %v1382_v16 = vmul.f32 %v589_v11, %v572_v13  ;;  %v575_v17 = vpop.f32.mrb[4].mxu1 }
 0x2d0   : > { %v576_v18 = vadd.f32 %v575_v17, %v494_v15  ;;  %v577_v19 = vpop.f32.mrb[5].mxu1 }
 0x2d1   : > { %v578_v20 = vadd.f32 %v577_v19, %v494_v15  ;;  %v1076_v21 = vpack.i.bf16 %v1382_v16, %v1380_v14 }
 0x2d2   : > { %v1386_v22 = vmul.f32 %v585_v9, %v576_v18 }
 0x2d3   : > { %v1388_v23 = vmul.f32 %v589_v11, %v578_v20  ;;  %1077 = vrot.lane.b32.xlu1 %v1076_v21, %s1226_s13 }
 0x2d4   : > { %v998_v24 = vpack.c.bf16 %v1386_v22, %v1380_v14 }
 0x2d5   : > { %v1116_v25 = vpack.i.bf16 %v1388_v23, %v1386_v22  ;;  %v996_v26 = vpack.c.bf16 %v1388_v23, %v1382_v16  ;;  %v598_v16 = vld [vmem:[%s1502_s6 + $0x10] sm:$0xff] }
 0x2d7   : > { %1117 = vrot.lane.b32.xlu0 %v1116_v25, %s1226_s13  ;;  %1082 = vrot.lane.b32.xlu1 %v1076_v21, %s1230_s21  ;;  %s1233_s13 = smov 126  }
 0x2db   : > { %1122 = vrot.lane.b32.xlu0 %v1116_v25, %s1230_s21  ;;  %1087 = vrot.lane.b32.xlu1 %v1076_v21, %s1231_s22  ;;  %s1161_s21 = sshll.u32 %s1234_s9, 4  ;;  %s1162_s21 = int_to_ptr.vmem [resolvable:$false] %s1161_s21 }
 0x2df   : > { %1127 = vrot.lane.b32.xlu0 %v1116_v25, %s1231_s22  ;;  %1092 = vrot.lane.b32.xlu1 %v1076_v21, %s1232_s23  ;;  %s1163_s22 = scalar_lea.vmem %s1162_s21, 1024 }
 0x2e3   : > { %1132 = vrot.lane.b32.xlu0 %v1116_v25, %s1232_s23  ;;  %1097 = vrot.lane.b32.xlu1 %v1076_v21, %s1225_s12 }
 0x2e7   : > { %1137 = vrot.lane.b32.xlu0 %v1116_v25, %s1225_s12  ;;  %1102 = vrot.lane.b32.xlu1 %v1076_v21, %s1224_s10 }
 0x2eb   : > { %1142 = vrot.lane.b32.xlu0 %v1116_v25, %s1224_s10  ;;  %1107 = vrot.lane.b32.xlu1 %v1076_v21, %s1233_s13 }
 0x2ef   : > { %1147 = vrot.lane.b32.xlu0 %v1116_v25, %s1233_s13  ;;  %1112 = vrot.lane.b32.xlu1 %v1076_v21, %s1223_s26  ;;  %s296_s13 = sand.u32 1, %s1211_s28  }
 0x2f0   : > { %s919_s24 = sshll.u32 %s296_s13, 5  ;;  %s1455_s19 = scalar_lea.sflag [#allocation3], %s296_s13 }
 0x2f1   : > { %s298_s25 = scalar_lea.vmem [#allocation2], %s919_s24 }
 0x2f2   : > { %s853_s17 = sshll.u32 %s298_s25, 4  ;;  %s1448_s17 = int_to_ptr.vmem [resolvable:$true] %s853_s17 }
 0x2f3   : > { %1152 = vrot.lane.b32.xlu0 %v1116_v25, %s1223_s26  ;;  %740 = vperm.xlu1 %1075, %v736_v28   ;;  %s1453_s26 = scalar_lea.hbm %s1504_s8, %s951_s18  ;;  %s1157_s20 = scalar_lea.vmem %s1448_s17, 512 }
 0x2f4   : > { %p1158_p11 = scmp.ne.s32.totalorder %s1448_s17, %s1157_s20  ;;  %p1164_p0 = scmp.lt.s32.totalorder %s1448_s17, %s1162_s21 }
 0x2f5   : > { %p1165_p1 = scmp.lt.s32.totalorder %s1163_s22, %s1157_s20 }
 0x2f6   : > { %p1159_p12 = pnand %p1158_p11, %p1320_p5 }
 0x2f7   : > { %745 = vperm.xlu0 %1054, %v737_v29   ;;  %p1166_p2 = por %p1165_p1, %p1164_p0 }
 0x2f8   : > { %p1160_p13 = pneg %p1159_p12 }
 0x2fa   : > { %p1167_p3 = pnand %p1166_p2, %p1160_p13 }
 0x345   : > { %v1078_v30 = vpop.permute.xlu1 %1077 }
 0x346   : > { %v1080_v31 = vunpack.i.h.bf16 %v1078_v30  ;;  %v1079_v32 = vunpack.i.l.bf16 %v1078_v30 }
 0x348   : > { %v612_v37 = vsel %vm465_vm5, %v1079_v32, %v1080_v31 }
 0x349   : > { %v1118_v33 = vpop.permute.xlu0 %1117  ;;  %v1083_v34 = vpop.permute.xlu1 %1082 }
 0x34a   : > { %v1120_v35 = vunpack.i.h.bf16 %v1118_v33  ;;  %v1119_v36 = vunpack.i.l.bf16 %v1118_v33  ;;  %v1085_v38 = vunpack.i.h.bf16 %v1083_v34  ;;  %v1084_v39 = vunpack.i.l.bf16 %v1083_v34 }
 0x34c   : > { %v956_v40 = vpack.c.bf16 %v1120_v35, %v1080_v31  ;;  %v613_v41 = vsel %vm465_vm5, %v1119_v36, %v1120_v35  ;;  %v629_v50 = vsel %vm628_vm12, %v1084_v39, %v1085_v38  ;;  %vm977_vm5 = vmpackc.low %vm422_vm4, %vm422_vm4 }
 0x34d   : > { %v1123_v42 = vpop.permute.xlu0 %1122  ;;  %v1088_v43 = vpop.permute.xlu1 %1087  ;;  %v959_v44 = vpack.c.bf16 %v613_v41, %v612_v37 }
 0x34e   : > { %v1125_v45 = vunpack.i.h.bf16 %v1123_v42  ;;  %v1124_v46 = vunpack.i.l.bf16 %v1123_v42  ;;  %958 = vmatprep.subr.msk.bf16.mxu0 %vm957_vm11, %v956_v40  ;;  %v1090_v47 = vunpack.i.h.bf16 %v1088_v43  ;;  %v1089_v48 = vunpack.i.l.bf16 %v1088_v43 }
 0x34f   : > { %960 = vmatpush1.bf16.msra.mxu0 %v959_v44 }
 0x350   : > { %v961_v49 = vpack.c.bf16 %v1125_v45, %v1085_v38  ;;  %v630_v51 = vsel %vm628_vm12, %v1124_v46, %v1125_v45  ;;  %v646_v57 = vsel %vm645_vm14, %v1089_v48, %v1090_v47 }
 0x351   : > { %v1128_v52 = vpop.permute.xlu0 %1127  ;;  %v1093_v53 = vpop.permute.xlu1 %1092  ;;  %v964_v54 = vpack.c.bf16 %v630_v51, %v629_v50 }
 0x352   : > { %v1130_v55 = vunpack.i.h.bf16 %v1128_v52  ;;  %v1129_v56 = vunpack.i.l.bf16 %v1128_v52  ;;  %963 = vmatprep.subr.msk.bf16.mxu0 %vm962_vm13, %v961_v49  ;;  %v1095_v59 = vunpack.i.h.bf16 %v1093_v53  ;;  %v1094_v60 = vunpack.i.l.bf16 %v1093_v53  ;;  %v596_v52 = vld [vmem:[%s1502_s6] sm:$0xff]  ;;  %v599_v53 = vld [vmem:[%s1502_s6 + $0x18] sm:$0xff] }
 0x353   : > { %965 = vmatpush1.bf16.msra.mxu0 %v964_v54 }
 0x354   : > { %v966_v58 = vpack.c.bf16 %v1130_v55, %v1090_v47  ;;  %v647_v61 = vsel %vm645_vm14, %v1129_v56, %v1130_v55  ;;  %v663_v7 = vsel %vm662_vm0, %v1094_v60, %v1095_v59 }
 0x355   : > { %v1133_v62 = vpop.permute.xlu0 %1132  ;;  %v1098_v63 = vpop.permute.xlu1 %1097  ;;  %v969_v1 = vpack.c.bf16 %v647_v61, %v646_v57 }
 0x356   : > { %v1135_v2 = vunpack.i.h.bf16 %v1133_v62  ;;  %v1134_v3 = vunpack.i.l.bf16 %v1133_v62  ;;  %968 = vmatprep.subr.msk.bf16.mxu0 %vm967_vm15, %v966_v58  ;;  %v1100_v4 = vunpack.i.h.bf16 %v1098_v63  ;;  %v1099_v5 = vunpack.i.l.bf16 %v1098_v63 }
 0x357   : > { %970 = vmatpush1.bf16.msra.mxu0 %v969_v1 }
 0x358   : > { %v971_v6 = vpack.c.bf16 %v1135_v2, %v1095_v59  ;;  %v664_v8 = vsel %vm662_vm0, %v1134_v3, %v1135_v2  ;;  %v679_v13 = vsel %vm422_vm4, %v1099_v5, %v1100_v4 }
 0x359   : > { %v1138_v9 = vpop.permute.xlu0 %1137  ;;  %v1103_v10 = vpop.permute.xlu1 %1102  ;;  %v974_v11 = vpack.c.bf16 %v664_v8, %v663_v7 }
 0x35a   : > { %v1140_v12 = vunpack.i.h.bf16 %v1138_v9  ;;  %v1139_v0 = vunpack.i.l.bf16 %v1138_v9  ;;  %973 = vmatprep.subr.msk.bf16.mxu0 %vm972_vm1, %v971_v6  ;;  %v1105_v17 = vunpack.i.h.bf16 %v1103_v10  ;;  %v1104_v18 = vunpack.i.l.bf16 %v1103_v10 }
 0x35b   : > { %975 = vmatpush1.bf16.msra.mxu0 %v974_v11 }
 0x35c   : > { %v976_v15 = vpack.c.bf16 %v1140_v12, %v1100_v4  ;;  %v680_v19 = vsel %vm422_vm4, %v1139_v0, %v1140_v12  ;;  %v695_v32 = vsel %vm411_vm3, %v1104_v18, %v1105_v17  ;;  %vm987_vm4 = vmpackc.low %vm711_vm7, %vm711_vm7 }
 0x35d   : > { %v1143_v20 = vpop.permute.xlu0 %1142  ;;  %v1108_v21 = vpop.permute.xlu1 %1107  ;;  %v979_v25 = vpack.c.bf16 %v680_v19, %v679_v13 }
 0x35e   : > { %v1145_v27 = vunpack.i.h.bf16 %v1143_v20  ;;  %v1144_v28 = vunpack.i.l.bf16 %v1143_v20  ;;  %978 = vmatprep.subr.msk.bf16.mxu0 %vm977_vm5, %v976_v15  ;;  %v1110_v29 = vunpack.i.h.bf16 %v1108_v21  ;;  %v1109_v30 = vunpack.i.l.bf16 %v1108_v21 }
 0x35f   : > { %980 = vmatpush1.bf16.msra.mxu0 %v979_v25 }
 0x360   : > { %v981_v31 = vpack.c.bf16 %v1145_v27, %v1105_v17  ;;  %v696_v33 = vsel %vm411_vm3, %v1144_v28, %v1145_v27  ;;  %v712_v39 = vsel %vm711_vm7, %v1109_v30, %v1110_v29  ;;  %vm992_vm3 = vmpackc.low %vm400_vm2, %vm400_vm2 }
 0x361   : > { %v1148_v34 = vpop.permute.xlu0 %1147  ;;  %v1113_v35 = vpop.permute.xlu1 %1112  ;;  %v984_v36 = vpack.c.bf16 %v696_v33, %v695_v32 }
 0x362   : > { %v1150_v37 = vunpack.i.h.bf16 %v1148_v34  ;;  %v1149_v38 = vunpack.i.l.bf16 %v1148_v34  ;;  %983 = vmatprep.subr.msk.bf16.mxu0 %vm982_vm6, %v981_v31  ;;  %v1115_v41 = vunpack.i.h.bf16 %v1113_v35  ;;  %v1114_v42 = vunpack.i.l.bf16 %v1113_v35 }
 0x363   : > { %985 = vmatpush1.bf16.msra.mxu0 %v984_v36 }
 0x364   : > { %v986_v40 = vpack.c.bf16 %v1150_v37, %v1110_v29  ;;  %v713_v43 = vsel %vm711_vm7, %v1149_v38, %v1150_v37  ;;  %v728_v49 = vsel %vm400_vm2, %v1114_v42, %v1115_v41 }
 0x365   : > { %v1153_v44 = vpop.permute.xlu0 %1152  ;;  %v989_v45 = vpack.c.bf16 %v713_v43, %v712_v39 }
 0x366   : > { %v1155_v46 = vunpack.i.h.bf16 %v1153_v44  ;;  %v1154_v47 = vunpack.i.l.bf16 %v1153_v44  ;;  %988 = vmatprep.subr.msk.bf16.mxu0 %vm987_vm4, %v986_v40 }
 0x367   : > { %990 = vmatpush1.bf16.msra.mxu0 %v989_v45 }
 0x368   : > { %v991_v48 = vpack.c.bf16 %v1155_v46, %v1115_v41  ;;  %v729_v50 = vsel %vm400_vm2, %v1154_v47, %v1155_v46 }
 0x369   : > { %v994_v51 = vpack.c.bf16 %v729_v50, %v728_v49 }
 0x36a   : > { %993 = vmatprep.subr.msk.bf16.mxu0 %vm992_vm3, %v991_v48 }
 0x36b   : > { %995 = vmatpush1.bf16.msra.mxu0 %v994_v51 }
 0x36c   : > { %997 = vmatprep.subr.bf16.mxu0 %v996_v26 }
 0x36f   : > { %999 = vmatpush1.bf16.msra.mxu0 %v998_v24 }
 0x372   : > { %819 = vmatmul.mubr.f32.vlgmr.msra.gmra.mrb[0].mxu0 %v596_v52  ;;  %v741_v14 = vpop.permute.xlu1 %740 }
 0x373   : > { %944 = vmatprep.mubr.msk.f32.mxu0 %vm496_vm10, %v599_v53 }
 0x376   : > { %825 = vmatmul.mubr.f32.gmra.mrb[2].mxu0 %v598_v16  ;;  %v746_v55 = vpop.permute.xlu0 %745 }
 0x445   : > { %v820_v22 = vpop.f32.mrb[0].mxu0 }
 0x446   : > { %v821_v23 = vadd.f32 %v820_v22, %v741_v14  ;;  %v822_v24 = vpop.f32.mrb[1].mxu0 }
 0x447   : > { %v823_v26 = vadd.f32 %v822_v24, %v741_v14 }
 0x448   : > { %v831_v54 = vmax.f32 %v821_v23, 0.0 }
 0x449   : > { %v832_v56 = vmax.f32 %v823_v26, 0.0  ;;  %v826_v57 = vpop.f32.mrb[2].mxu0 }
 0x44a   : > { %835 = vst [vmem:[%s298_s25] sm:$0xff] %v831_v54  ;;  %v827_v58 = vadd.f32 %v826_v57, %v746_v55  ;;  %v828_v59 = vpop.f32.mrb[3].mxu0 }
 0x44b   : > { %836 = vst [vmem:[%s298_s25 + $0x8] sm:$0xff] %v832_v56  ;;  %v829_v60 = vadd.f32 %v828_v59, %v746_v55 }
 0x44c   : > { %v833_v61 = vmax.f32 %v827_v58, 0.0 }
 0x44d   : > { %v834_v62 = vmax.f32 %v829_v60, 0.0 }
 0x44e   : > { %837 = vst [vmem:[%s298_s25 + $0x10] sm:$0xff] %v833_v61 }
 0x44f   : > { %838 = vst [vmem:[%s298_s25 + $0x18] sm:$0xff] %v834_v62 }
 0x450   : > { %1170 = shalt.err (!%p1167_p3)
}
 0x451   : > { %s1171_s23 = scalar_lea.hbm %s1453_s26, 512  ;;  %s1175_s25 = scalar_lea.hbm %s1504_s8, 1024 }
 0x452   : > { %p1172_p4 = scmp.ne.s32.totalorder %s1453_s26, %s1171_s23  ;;  %p1176_p9 = scmp.lt.u32.totalorder %s1453_s26, %s1504_s8 }
 0x453   : > { %p1177_p10 = scmp.lt.u32.totalorder %s1175_s25, %s1171_s23  ;;  %p1179_p12 = scmp.lt.u32.totalorder %s1171_s23, %s1453_s26 }
 0x454   : > { %p1173_p7 = pnand %p1172_p4, %p1320_p5 }
 0x455   : > { %p1178_p11 = por %p1177_p10, %p1176_p9 }
 0x456   : > { %p1174_p8 = pneg %p1173_p7 }
 0x457   : > { %p1180_p13 = por %p1179_p12, %p1178_p11 }
 0x459   : > { %p1181_p0 = pnand %p1180_p13, %p1174_p8 }
 0x45b   : > { %1184 = shalt.err (!%p1181_p0)
}
 0x45c   : > { %s1235_s10 = smov 256   ;;  %s1236_s20 = smov 16  }
 0x45d   : > { %1000 = dma.vmem_to_hbm [thread:$0]  (%p1320_p5), %s1448_s17, 512, %s1453_s26, %s1455_s19, %s1235_s10, %s1235_s10, %s1236_s20  }
 0x45e PF: > { %p1006_p1 = scmp.ge.s32.totalorder %s1219_s30, 2  ;;  %s868_s9 = sand.u32 1, %s1207_s27  }
 0x45f   : > { %s869_s21 = scalar_lea.sflag [#allocation3], %s868_s9 }
 0x460   : > { %p1003_p2 = pnand %p1006_p1, %p1324_p6 }
 0x462   : > { %1202 = dma.done.wait (!%p1003_p2), %s869_s21, 512  }
 0x463   : > { %1204 = vsyncadd (!%p1003_p2), %s869_s21, 4294966784  ;;  %p18_p3 = scmp.ge.s32.totalorder %s1307_s11, 4   ;;  %s1507_s27 = smov %s1211_s28 }
 0x464   : > { %s1508_s28 = smov %s1215_s29  ;;  %s1509_s29 = smov %s1318_s14 }
 0x465   : > { %s1510_s30 = smov %s1307_s11  ;;  %20 = sbr.rel (!%p18_p3) target bundleno = 3 (0x3), region = 87 }
 0x46c   :  { %874 = vsyncpa [#allocation3], 1 }
 0x46d   :  { %876 = vsyncpa [#allocation3 + $0x1], 1 }

</bundles_post_ra>
